<compile_context>
chip_gen: v5e
topology: v5e:2x2
jax: 0.10.0
libtpu: 0.0.40
codegen_flags: <defaults>
</compile_context>

<pallas_src>
import functools

import jax
import jax.numpy as jnp
from jax.experimental import pallas as pl
from jax.experimental.pallas import tpu as pltpu


def _mm_gcn_kernel(adj_ref, emb_ref, out_ref, *, compute_dtype):
    """Tiled matmul accumulating into the VMEM-resident output block.

    grid = (M_pad//tm, F//tn, N//tk); the reduction axis (k) is last and marked
    'arbitrary'; the output BlockSpec returns the same (i, j) block for every k,
    so out_ref acts as the f32 accumulator.
    """
    @pl.when(pl.program_id(2) == 0)
    def _():
        out_ref[...] = jnp.zeros_like(out_ref)

    a = adj_ref[...]
    e = emb_ref[...]
    if compute_dtype is not None:
        # Per-tile cast keeps f32 HBM residency (no extra wrapper pass over adj)
        # while getting the bf16 MXU rate on v5e/v6e/v7x; accumulation is f32.
        a = a.astype(compute_dtype)
        e = e.astype(compute_dtype)
    out_ref[...] += jnp.dot(a, e, preferred_element_type=jnp.float32)

    @pl.when(pl.program_id(2) == pl.num_programs(2) - 1)
    def _():
        # relu(leaky_relu(y, 0.5)) == relu(y); the 4 identical GCN branches
        # sum to 4 * relu(y).
        out_ref[...] = jnp.maximum(4.0 * out_ref[...], 0.0)


def _round_up(x, m):
    return ((x + m - 1) // m) * m


def _pick_tile(dim, pref, align):
    """Largest tile <= pref that is a multiple of `align` and divides `dim`.

    Falls back to the full dimension (always a legal Pallas block)."""
    t = min(pref, dim)
    t = (t // align) * align
    while t >= align:
        if dim % t == 0:
            return t
        t -= align
    return dim


def mm_gcn_ddi_forward(adj, m1_embed, m2_embed, mednum, *, compute_dtype=None):
    """Pallas implementation of MM_gcn_ddi.forward.

    compute_dtype: optional dtype (e.g. jnp.bfloat16) the matmul operands are
    cast to *inside the kernel*; HBM residency and accumulation stay float32.
    """
    # TODO(synk): in production, store the fused (2*mednum, F) embedding as a
    # single parameter to avoid re-materializing this concat every forward.
    embeds = jnp.concatenate([m1_embed, m2_embed], axis=0)  # (2*mednum, F)
    N, F = embeds.shape
    assert adj.shape == (N, N)
    assert N == 2 * mednum

    # Only the first mednum rows of the output are kept. Pad the M extent up to
    # a multiple of 8 (rows mednum..M_pad-1 already exist inside adj since
    # N = 2*mednum >= M_pad for any mednum >= 8) and slice the result.
    row_align = 8
    m_pad = _round_up(mednum, row_align)
    adj_rows = adj
    if m_pad > N:  # only possible for tiny, unaligned mednum
        adj_rows = jnp.pad(adj, ((0, m_pad - N), (0, 0)))

    # Tile plan (HBM-traffic oriented):
    #   tn = F when modest -> adj is read from HBM exactly once.
    #   tk pref 1024 (f32 residency) keeps the double-buffered footprint
    #   <= ~9 MiB: inside v5e's 16 MiB scoped default and v7x's 32 MiB scoped.
    tm = _pick_tile(m_pad, 512, row_align)
    tn = F if F <= 512 else _pick_tile(F, 512, 128)
    tk = _pick_tile(N, 1024, 128)

    # v7x has 2 TensorCores populated only via 'parallel' grid axes: make sure
    # the parallel axes have at least 2 combined steps.
    if (m_pad // tm) * (F // tn) < 2:
        if tm % (2 * row_align) == 0:
            tm //= 2
        elif tn % 256 == 0:
            tn //= 2

    grid = (m_pad // tm, F // tn, N // tk)

    itemsize = 4  # f32 HBM residency
    cost = pl.CostEstimate(
        flops=2 * m_pad * N * F,
        transcendentals=0,
        bytes_accessed=(m_pad * N * itemsize) * (F // tn)
        + (N * F * itemsize) * (m_pad // tm)
        + m_pad * F * itemsize,
    )

    kernel = functools.partial(_mm_gcn_kernel, compute_dtype=compute_dtype)

    out = pl.pallas_call(
        kernel,
        out_shape=jax.ShapeDtypeStruct((m_pad, F), jnp.float32),
        grid_spec=pltpu.PrefetchScalarGridSpec(
            num_scalar_prefetch=0,
            grid=grid,
            in_specs=[
                # Only rows [0, m_pad) of adj are ever touched; the discarded
                # bottom half of the graph is never read.
                pl.BlockSpec((tm, tk), lambda i, j, k: (i, k)),  # adj tile
                pl.BlockSpec((tk, tn), lambda i, j, k: (k, j)),  # embeds tile
            ],
            out_specs=pl.BlockSpec((tm, tn), lambda i, j, k: (i, j)),
        ),
        compiler_params=pltpu.CompilerParams(
            dimension_semantics=("parallel", "parallel", "arbitrary")
        ),
        cost_estimate=cost,
    )(adj_rows, embeds)

    if m_pad != mednum:
        out = out[:mednum]
    return out  # (mednum, F)


def xavier_uniform(key, shape, dtype=jnp.float32):
    """Deterministic nn.init.xavier_uniform_ equivalent for a 2-D weight."""
    fan_out, fan_in = shape
    bound = (6.0 / (fan_in + fan_out)) ** 0.5
    return jax.random.uniform(key, shape, dtype=dtype, minval=-bound, maxval=bound)


def reference_forward(adj, m1_embed, m2_embed, mednum):
    """Pure-JAX reference mirroring the PyTorch code line-by-line."""
    embeds1 = jnp.concatenate([m1_embed, m2_embed], axis=0)
    lats1 = [embeds1]
    gnn_lats = []
    for _ in range(2):
        tem1 = jax.nn.leaky_relu(adj @ lats1[-1], negative_slope=0.5)
        tem1 = jax.nn.relu(tem1)
        gnn_lats.append(tem1)
        tem2 = jax.nn.leaky_relu(adj @ lats1[-1], negative_slope=0.5)
        tem2 = jax.nn.relu(tem2)
        gnn_lats.append(tem2)
    gnn_embeds = sum(gnn_lats)
    return gnn_embeds[:mednum]


def _run_case(key, mednum, featuredim):
    N = 2 * mednum
    k_m1, k_m2, k_adj = jax.random.split(key, 3)
    m1_embed = xavier_uniform(k_m1, (mednum, featuredim))
    m2_embed = xavier_uniform(k_m2, (mednum, featuredim))
    # Synthetic (dense) DDI adjacency; torch.spmm with a dense rhs == dense matmul.
    adj = jax.random.uniform(k_adj, (N, N), dtype=jnp.float32)
    adj = adj / jnp.sum(adj, axis=1, keepdims=True)  # row-normalized

    ref = reference_forward(adj, m1_embed, m2_embed, mednum)

    # f32 path: exact match with the reference.
    out_f32 = jax.block_until_ready(
        mm_gcn_ddi_forward(adj, m1_embed, m2_embed, mednum)
    )
    assert out_f32.shape == (mednum, featuredim)
    assert jnp.allclose(out_f32, ref, atol=1e-5, rtol=1e-5)

    # bf16-MXU path (in-kernel cast, f32 accumulation): relaxed tolerance.
    out_bf16 = jax.block_until_ready(
        mm_gcn_ddi_forward(adj, m1_embed, m2_embed, mednum, compute_dtype=jnp.bfloat16)
    )
    assert out_bf16.shape == (mednum, featuredim)
    assert jnp.allclose(out_bf16, ref, atol=5e-3, rtol=5e-2)


if __name__ == "__main__":
    key = jax.random.PRNGKey(0)
    k0, k1 = jax.random.split(key)

    # Main small case (aligned dims).
    _run_case(k0, mednum=128, featuredim=256)
    # Unaligned case: mednum not a multiple of 8, F not a multiple of 128
    # (exercises the M-padding path and full-dim tn/tk blocks).
    _run_case(k1, mednum=100, featuredim=192)

    print("KERNEL_OK")
</pallas_src>

<mosaic_0001>
module attributes {stable_mosaic.version = 11 : i64} {
  func.func @_mm_gcn_kernel(%arg0: i32, %arg1: i32, %arg2: i32, %arg3: memref<64x256xf32, #tpu.memory_space<vmem>>, %arg4: memref<256x256xf32, #tpu.memory_space<vmem>>, %arg5: memref<64x256xf32, #tpu.memory_space<vmem>>) attributes {dimension_semantics = [#tpu.dimension_semantics<parallel>, #tpu.dimension_semantics<parallel>, #tpu.dimension_semantics<arbitrary>], iteration_bounds = array<i64: 2, 1, 1>, scalar_prefetch = 0 : i64, scratch_operands = 0 : i64, tpu.core_type = #tpu.core_type<tc>, window_params = [{transform_indices = @transform_0, window_bounds = array<i64: 64, 256>}, {transform_indices = @transform_1, window_bounds = array<i64: 256, 256>}, {transform_indices = @transform_2, window_bounds = array<i64: 64, 256>}]} {
    %c0_i32 = arith.constant 0 : i32
    %0 = arith.cmpi eq, %arg2, %c0_i32 : i32
    %1 = arith.extui %0 : i1 to i32
    %c0_i32_0 = arith.constant 0 : i32
    %2 = arith.cmpi ne, %1, %c0_i32_0 : i32
    scf.if %2 {
      %cst_10 = arith.constant 0.000000e+00 : f32
      %12 = vector.broadcast %cst_10 : f32 to vector<64x256xf32>
      %c0_11 = arith.constant 0 : index
      %c0_12 = arith.constant 0 : index
      %13 = vector.load %arg5[%c0_11, %c0_12] : memref<64x256xf32, #tpu.memory_space<vmem>>, vector<64x256xf32>
      tpu.vector_store %arg5[%c0_11, %c0_12], %12 {strides = array<i32>} : memref<64x256xf32, #tpu.memory_space<vmem>>, vector<64x256xf32>,
    } else {
    }
    %c0 = arith.constant 0 : index
    %c0_1 = arith.constant 0 : index
    %3 = vector.load %arg3[%c0, %c0_1] : memref<64x256xf32, #tpu.memory_space<vmem>>, vector<64x256xf32>
    %c0_2 = arith.constant 0 : index
    %c0_3 = arith.constant 0 : index
    %4 = vector.load %arg4[%c0_2, %c0_3] : memref<256x256xf32, #tpu.memory_space<vmem>>, vector<256x256xf32>
    %c0_4 = arith.constant 0 : index
    %c0_5 = arith.constant 0 : index
    %5 = vector.load %arg5[%c0_4, %c0_5] : memref<64x256xf32, #tpu.memory_space<vmem>>, vector<64x256xf32>
    %cst = arith.constant dense<0.000000e+00> : vector<64x256xf32>
    %6 = tpu.matmul %3, %4, %cst {dimension_numbers = #tpu.dot_dimension_numbers<[1], [0], [0], [1], [0, 0, 1, 1], [], []>} : vector<64x256xf32>, vector<256x256xf32>, vector<64x256xf32> -> vector<64x256xf32>
    %7 = arith.addf %5, %6 : vector<64x256xf32>
    %c0_6 = arith.constant 0 : index
    %c0_7 = arith.constant 0 : index
    %8 = vector.load %arg5[%c0_6, %c0_7] : memref<64x256xf32, #tpu.memory_space<vmem>>, vector<64x256xf32>
    tpu.vector_store %arg5[%c0_6, %c0_7], %7 {strides = array<i32>} : memref<64x256xf32, #tpu.memory_space<vmem>>, vector<64x256xf32>,
    %c0_i32_8 = arith.constant 0 : i32
    %9 = arith.cmpi eq, %arg2, %c0_i32_8 : i32
    %10 = arith.extui %9 : i1 to i32
    %c0_i32_9 = arith.constant 0 : i32
    %11 = arith.cmpi ne, %10, %c0_i32_9 : i32
    scf.if %11 {
      %c0_10 = arith.constant 0 : index
      %c0_11 = arith.constant 0 : index
      %12 = vector.load %arg5[%c0_10, %c0_11] : memref<64x256xf32, #tpu.memory_space<vmem>>, vector<64x256xf32>
      %cst_12 = arith.constant 4.000000e+00 : f32
      %13 = vector.broadcast %cst_12 : f32 to vector<64x256xf32>
      %14 = arith.mulf %13, %12 : vector<64x256xf32>
      %cst_13 = arith.constant 0.000000e+00 : f32
      %15 = vector.broadcast %cst_13 : f32 to vector<64x256xf32>
      %16 = arith.maximumf %14, %15 : vector<64x256xf32>
      %c0_14 = arith.constant 0 : index
      %c0_15 = arith.constant 0 : index
      %17 = vector.load %arg5[%c0_14, %c0_15] : memref<64x256xf32, #tpu.memory_space<vmem>>, vector<64x256xf32>
      tpu.vector_store %arg5[%c0_14, %c0_15], %16 {strides = array<i32>} : memref<64x256xf32, #tpu.memory_space<vmem>>, vector<64x256xf32>,
    } else {
    }
    return
  }
  func.func @transform_0(%arg0: i32, %arg1: i32, %arg2: i32) -> (i32, i32) {
    %c0_i32 = arith.constant 0 : i32
    return %arg0, %arg2 : i32, i32
  }
  func.func @transform_1(%arg0: i32, %arg1: i32, %arg2: i32) -> (i32, i32) {
    %c0_i32 = arith.constant 0 : i32
    return %arg2, %arg1 : i32, i32
  }
  func.func @transform_2(%arg0: i32, %arg1: i32, %arg2: i32) -> (i32, i32) {
    %c0_i32 = arith.constant 0 : i32
    return %arg0, %arg1 : i32, i32
  }
}

</mosaic_0001>

<bundles_post_ra>
// kernel: tpu_custom_call.1
= control target key start
LH: loop header
LB: loop body
LE: loop exit
PB: predicated region body
PF: predicated region fallthrough
CT: control target
= control target key end

     0   :  { %7 = vsyncpa [#allocation3], 0  ;;  %s1194_s0 = inlined_call_operand.hbm [shape: f32[256,256], index: 0, kind: input, shape index: {}]   ;;  %s1195_s1 = inlined_call_operand.hbm [shape: f32[256,256], index: 1, kind: input, shape index: {}]   ;;  %s1196_s2 = inlined_call_operand.hbm [shape: f32[128,256], index: 2, kind: output, shape index: {}]  }
   0x1   :  { %9 = vsyncpa [#allocation3 + $0x1], 0 }
   0x2   :  { %10 = vsyncpa [#allocation6], 0 }
   0x3   :  { %11 = vsyncpa [#allocation4], 0 }
   0x4   :  { %13 = vsyncpa [#allocation4 + $0x1], 0  ;;  %s998_s9 = smov 0   ;;  %s1000_s10 = smov 0  }
   0x5   :  { %s1002_s11 = smov 0   ;;  %s1004_s12 = smov 0  }
   0x6   :  { %s1006_s13 = smov 0   ;;  %s1008_s14 = smov 0  }
   0x7 LB: > { %s729_s15 = sadd.s32 4294967295, %s976_s14   ;;  %s730_s16 = sadd.s32 4294967294, %s976_s14   ;;  %s976_s14 = sphi %s1008_s14, %s19_s14   ;;  %s972_s13 = sphi %s1006_s13, %s1208_s13   ;;  %s968_s12 = sphi %s1004_s12, %s1207_s12   ;;  %s964_s11 = sphi %s1002_s11, %s1206_s11   ;;  %s960_s10 = sphi %s1000_s10, %s1205_s10   ;;  %s956_s9 = sphi %s998_s9, %s1204_s9  }
   0x8   : > { %p60_p0 = scmp.ne.s32.totalorder %s960_s10, %s956_s9  ;;  %p1032_p1 = scmp.eq.s32.totalorder %s729_s15, 0 }
   0x9   : > { %p1036_p2 = scmp.eq.s32.totalorder %s729_s15, 1  ;;  %p120_p3 = scmp.eq.s32.totalorder %s730_s16, 1 }
   0xa   : > { %p1042_p4 = por %p1032_p1, %p60_p0  ;;  %p731_p5 = scmp.ge.s32.totalorder %s976_s14, 1 }
   0xb   : > { %p1047_p6 = por %p120_p3, %p60_p0  ;;  %p127_p7 = scmp.lt.s32.totalorder %s976_s14, 3 }
   0xc   : > { %s144_s23 = sshll.u32 %s1195_s1, 4  ;;  %s978_s25 = smov [#allocation5]   ;;  %s145_s23 = int_to_ptr.hbm [resolvable:$true] %s144_s23 }
   0xd   : > { %p1055_p8 = pnand %p731_p5, %p127_p7  ;;  %s146_s26 = sshll.u32 %s978_s25, 4  ;;  %s147_s26 = int_to_ptr.vmem [resolvable:$true] %s146_s26 }
   0xe   : > { %p733_p11 = scmp.ge.s32.totalorder %s976_s14, 2  ;;  %s979_s27 = smov 256  }
   0xf   : > { %p760_p9 = pneg %p1055_p8  ;;  %s980_s28 = smov 16  }
  0x10   : > { %s38_s29 = sadd.s32 1, %s972_s13  ;;  %s47_s30 = sadd.s32 1, %s964_s11 }
  0x11   : > { %p761_p10 = pnand %p760_p9, %p1032_p1  ;;  %p40_p12 = scmp.ge.s32.totalorder %s38_s29, 2 }
  0x12   : > { %p54_p13 = scmp.ne.s32.totalorder %s964_s11, %s960_s10  ;;  %p55_p0 = scmp.eq.s32.totalorder %s976_s14, 0 }
  0x13   : > { %763 = dma.hbm_to_vmem [thread:$0]  (!%p761_p10), %s145_s23, 8192, %s147_s26, [#allocation6], %s979_s27, %s979_s27, %s980_s28  }
  0x14   : > { %s1210_s29 = smov (%p40_p12, %s38_s29), 0  ;;  %p1074_p3 = por %p55_p0, %p54_p13 }
  0x15   : > { %p1080_p5 = por %p1036_p2, %p54_p13  ;;  %s42_s5 = ssub.s32 %s972_s13, %s1210_s29 }
  0x16   : > { %p773_p7 = scmp.lt.s32.totalorder %s976_s14, 2  ;;  %p45_p9 = scmp.eq.s32.totalorder %s42_s5, 0 }
  0x17   : > { %s160_s6 = sand.u32 1, %s964_s11   ;;  %s749_s15 = sshll.u32 %s972_s13, 7 }
  0x18   : > { %s734_s7 = sshll.u32 %s160_s6, 7  ;;  %s172_s22 = scalar_lea.hbm %s1194_s0, %s749_s15 }
  0x19   : > { %s1089_s8 = scalar_select %p45_p9, %s964_s11, %s47_s30  }
  0x1a   : > { %s164_s23 = scalar_lea.vmem [#allocation2], %s734_s7  ;;  %s173_s18 = sshll.u32 %s172_s22, 4  ;;  %s174_s18 = int_to_ptr.hbm [resolvable:$true] %s173_s18 }
  0x1b   : > { %s175_s25 = sshll.u32 %s164_s23, 4  ;;  %p765_p2 = pnand %p773_p7, %p1074_p3  ;;  %s176_s25 = int_to_ptr.vmem [resolvable:$true] %s175_s25 }
  0x1c   : > { %s161_s26 = scalar_lea.sflag [#allocation3], %s160_s6  ;;  %187 = sbr.rel (%p1055_p8) target bundleno = 267 (0x10b), region = 28 }
  0x1d   : > { %767 = dma.hbm_to_vmem [thread:$0]  (!%p765_p2), %s174_s18, 2048, %s176_s25, %s161_s26, %s979_s27, %s979_s27, %s980_s28  }
  0x1e   : > { %s1103_s30 = sand.u32 (!%p1055_p8), 1, %s960_s10  }
  0x1f   : > { %s739_s5 = sshll.u32 (!%p1055_p8), %s1103_s30, 7  ;;  %s190_s7 = scalar_lea.sflag (!%p1055_p8), [#allocation3], %s1103_s30 }
  0x20   : > { %s1109_s3 = scalar_lea.vmem (!%p1055_p8), [#allocation2], %s739_s5 }
  0x21   : > { %943 = dma.done.wait (%p1042_p4), %s190_s7, 2048  }
  0x22   : > { %945 = vsyncadd (%p1042_p4), %s190_s7, 4294965248 }
  0x23   : > { %947 = dma.done.wait (%p1032_p1), [#allocation6], 8192  }
  0x24   : > { %949 = vsyncadd (%p1032_p1), [#allocation6], 4294959104  ;;  %v293_v0 = vld [vmem:[#allocation5 + $0xf8] sm:$0xff]  ;;  %v291_v2 = vld [vmem:[#allocation5 + $0xe8] sm:$0xff]  ;;  %s1137_s17 = scalar_lea.vmem [#allocation7], %s739_s5  ;;  %s751_s19 = sshll.u32 %s968_s12, 7 }
  0x25   : > { %v325_v1 = vld [vmem:[#allocation5 + $0x1f8] sm:$0xff]  ;;  %424 = vmatpush.msra.mxu2 %v293_v0  ;;  %v323_v3 = vld [vmem:[#allocation5 + $0x1e8] sm:$0xff]  ;;  %v292_v6 = vld [vmem:[#allocation5 + $0xf0] sm:$0xff]  ;;  %s620_s28 = scalar_lea.hbm %s1196_s2, %s751_s19  ;;  %s621_s6 = sshll.u32 %s1137_s17, 4  ;;  %s622_s6 = int_to_ptr.vmem [resolvable:$true] %s621_s6 }
  0x26   : > { %465 = vmatpush.msra.mxu3 %v325_v1  ;;  %v289_v4 = vld [vmem:[#allocation5 + $0xd8] sm:$0xff]  ;;  %v324_v7 = vld [vmem:[#allocation5 + $0x1f0] sm:$0xff]  ;;  %v290_v8 = vld [vmem:[#allocation5 + $0xe0] sm:$0xff]  ;;  %342 = vmatpush.msra.mxu0 %v292_v6  ;;  %s623_s12 = sshll.u32 %s620_s28, 4  ;;  %s606_s15 = scalar_lea.sflag [#allocation4], %s1103_s30  ;;  %s624_s12 = int_to_ptr.hbm [resolvable:$true] %s623_s12 }
  0x27   : > { %v321_v5 = vld [vmem:[#allocation5 + $0x1d8] sm:$0xff]  ;;  %425 = vmatpush.msra.mxu2 %v291_v2  ;;  %v322_v9 = vld [vmem:[#allocation5 + $0x1e0] sm:$0xff]  ;;  %383 = vmatpush.msra.mxu1 %v324_v7  ;;  %v287_v10 = vld [vmem:[#allocation5 + $0xc8] sm:$0xff]  ;;  %s904_s16 = sshra.s32 %s624_s12, 4  ;;  %s910_s25 = scalar_lea.hbm %s1196_s2, 256  ;;  %s905_s16 = int_to_ptr.hbm [resolvable:$true] %s904_s16 }
  0x28   : > { %466 = vmatpush.msra.mxu3 %v323_v3  ;;  %v319_v11 = vld [vmem:[#allocation5 + $0x1c8] sm:$0xff]  ;;  %v288_v12 = vld [vmem:[#allocation5 + $0xd0] sm:$0xff]  ;;  %343 = vmatpush.msra.mxu0 %v290_v8  ;;  %v285_v14 = vld [vmem:[#allocation5 + $0xb8] sm:$0xff]  ;;  %s906_s21 = scalar_lea.hbm %s905_s16, 128  ;;  %p911_p10 = scmp.lt.s32.totalorder %s905_s16, %s1196_s2 }
  0x29   : > { %426 = vmatpush.msra.mxu2 %v289_v4  ;;  %v320_v13 = vld [vmem:[#allocation5 + $0x1d0] sm:$0xff]  ;;  %384 = vmatpush.msra.mxu1 %v322_v9  ;;  %v317_v15 = vld [vmem:[#allocation5 + $0x1b8] sm:$0xff]  ;;  %v286_v16 = vld [vmem:[#allocation5 + $0xc0] sm:$0xff]  ;;  %p907_p1 = scmp.ne.s32.totalorder %s905_s16, %s906_s21  ;;  %p912_p12 = scmp.lt.s32.totalorder %s910_s25, %s906_s21 }
  0x2a   : > { %467 = vmatpush.msra.mxu3 %v321_v5  ;;  %v318_v17 = vld [vmem:[#allocation5 + $0x1c0] sm:$0xff]  ;;  %344 = vmatpush.msra.mxu0 %v288_v12  ;;  %v283_v18 = vld [vmem:[#allocation5 + $0xa8] sm:$0xff]  ;;  %v284_v20 = vld [vmem:[#allocation5 + $0xb0] sm:$0xff] }
  0x2b   : > { %427 = vmatpush.msra.mxu2 %v287_v10  ;;  %385 = vmatpush.msra.mxu1 %v320_v13  ;;  %v315_v19 = vld [vmem:[#allocation5 + $0x1a8] sm:$0xff]  ;;  %v316_v21 = vld [vmem:[#allocation5 + $0x1b0] sm:$0xff]  ;;  %v281_v22 = vld [vmem:[#allocation5 + $0x98] sm:$0xff]  ;;  %p908_p4 = pnand %p907_p1, %p1080_p5  ;;  %p913_p13 = por %p912_p12, %p911_p10 }
  0x2c   : > { %468 = vmatpush.msra.mxu3 %v319_v11  ;;  %345 = vmatpush.msra.mxu0 %v286_v16  ;;  %v313_v23 = vld [vmem:[#allocation5 + $0x198] sm:$0xff]  ;;  %v282_v24 = vld [vmem:[#allocation5 + $0xa0] sm:$0xff]  ;;  %v279_v26 = vld [vmem:[#allocation5 + $0x88] sm:$0xff] }
  0x2d   : > { %428 = vmatpush.msra.mxu2 %v285_v14  ;;  %386 = vmatpush.msra.mxu1 %v318_v17  ;;  %v314_v25 = vld [vmem:[#allocation5 + $0x1a0] sm:$0xff]  ;;  %v311_v27 = vld [vmem:[#allocation5 + $0x188] sm:$0xff]  ;;  %v280_v28 = vld [vmem:[#allocation5 + $0x90] sm:$0xff]  ;;  %p909_p8 = pneg %p908_p4 }
  0x2e   : > { %469 = vmatpush.msra.mxu3 %v317_v15  ;;  %346 = vmatpush.msra.mxu0 %v284_v20  ;;  %v312_v29 = vld [vmem:[#allocation5 + $0x190] sm:$0xff]  ;;  %v277_v30 = vld [vmem:[#allocation5 + $0x78] sm:$0xff]  ;;  %v278_v32 = vld [vmem:[#allocation5 + $0x80] sm:$0xff] }
  0x2f   : > { %429 = vmatpush.msra.mxu2 %v283_v18  ;;  %387 = vmatpush.msra.mxu1 %v316_v21  ;;  %v309_v31 = vld [vmem:[#allocation5 + $0x178] sm:$0xff]  ;;  %v310_v33 = vld [vmem:[#allocation5 + $0x180] sm:$0xff]  ;;  %v275_v34 = vld [vmem:[#allocation5 + $0x68] sm:$0xff]  ;;  %p914_p0 = pnand %p913_p13, %p909_p8 }
  0x30   : > { %470 = vmatpush.msra.mxu3 %v315_v19  ;;  %347 = vmatpush.msra.mxu0 %v282_v24  ;;  %v307_v35 = vld [vmem:[#allocation5 + $0x168] sm:$0xff]  ;;  %v276_v36 = vld [vmem:[#allocation5 + $0x70] sm:$0xff]  ;;  %v273_v38 = vld [vmem:[#allocation5 + $0x58] sm:$0xff] }
  0x31   : > { %430 = vmatpush.msra.mxu2 %v281_v22  ;;  %388 = vmatpush.msra.mxu1 %v314_v25  ;;  %v308_v37 = vld [vmem:[#allocation5 + $0x170] sm:$0xff]  ;;  %v305_v39 = vld [vmem:[#allocation5 + $0x158] sm:$0xff]  ;;  %v274_v40 = vld [vmem:[#allocation5 + $0x60] sm:$0xff] }
  0x32   : > { %471 = vmatpush.msra.mxu3 %v313_v23  ;;  %348 = vmatpush.msra.mxu0 %v280_v28  ;;  %v306_v41 = vld [vmem:[#allocation5 + $0x160] sm:$0xff]  ;;  %v271_v42 = vld [vmem:[#allocation5 + $0x48] sm:$0xff]  ;;  %v272_v44 = vld [vmem:[#allocation5 + $0x50] sm:$0xff] }
  0x33   : > { %431 = vmatpush.msra.mxu2 %v279_v26  ;;  %389 = vmatpush.msra.mxu1 %v312_v29  ;;  %v303_v43 = vld [vmem:[#allocation5 + $0x148] sm:$0xff]  ;;  %v304_v45 = vld [vmem:[#allocation5 + $0x150] sm:$0xff]  ;;  %v269_v46 = vld [vmem:[#allocation5 + $0x38] sm:$0xff] }
  0x34   : > { %472 = vmatpush.msra.mxu3 %v311_v27  ;;  %349 = vmatpush.msra.mxu0 %v278_v32  ;;  %v301_v47 = vld [vmem:[#allocation5 + $0x138] sm:$0xff]  ;;  %v270_v48 = vld [vmem:[#allocation5 + $0x40] sm:$0xff]  ;;  %v267_v50 = vld [vmem:[#allocation5 + $0x28] sm:$0xff] }
  0x35   : > { %432 = vmatpush.msra.mxu2 %v277_v30  ;;  %390 = vmatpush.msra.mxu1 %v310_v33  ;;  %v302_v49 = vld [vmem:[#allocation5 + $0x140] sm:$0xff]  ;;  %v299_v51 = vld [vmem:[#allocation5 + $0x128] sm:$0xff]  ;;  %v268_v52 = vld [vmem:[#allocation5 + $0x30] sm:$0xff] }
  0x36   : > { %473 = vmatpush.msra.mxu3 %v309_v31  ;;  %350 = vmatpush.msra.mxu0 %v276_v36  ;;  %v300_v53 = vld [vmem:[#allocation5 + $0x130] sm:$0xff]  ;;  %v265_v54 = vld [vmem:[#allocation5 + $0x18] sm:$0xff]  ;;  %v266_v56 = vld [vmem:[#allocation5 + $0x20] sm:$0xff] }
  0x37   : > { %433 = vmatpush.msra.mxu2 %v275_v34  ;;  %391 = vmatpush.msra.mxu1 %v308_v37  ;;  %v297_v55 = vld [vmem:[#allocation5 + $0x118] sm:$0xff]  ;;  %v298_v57 = vld [vmem:[#allocation5 + $0x120] sm:$0xff]  ;;  %v263_v58 = vld [vmem:[#allocation5 + $0x8] sm:$0xff] }
  0x38   : > { %474 = vmatpush.msra.mxu3 %v307_v35  ;;  %351 = vmatpush.msra.mxu0 %v274_v40  ;;  %v295_v59 = vld [vmem:[#allocation5 + $0x108] sm:$0xff]  ;;  %v246_v60 = vld [vmem:[%s1109_s3] sm:$0xff]  ;;  %v264_v62 = vld [vmem:[#allocation5 + $0x10] sm:$0xff] }
  0x39   : > { %434 = vmatpush.msra.mxu2 %v273_v38  ;;  %392 = vmatpush.msra.mxu1 %v306_v41  ;;  %v247_v61 = vld [vmem:[%s1109_s3 + $0x8] sm:$0xff]  ;;  %v296_v63 = vld [vmem:[#allocation5 + $0x110] sm:$0xff]  ;;  %v262_v0 = vld [vmem:[#allocation5] sm:$0xff] }
  0x3a   : > { %475 = vmatpush.msra.mxu3 %v305_v39  ;;  %352 = vmatpush.msra.mxu0 %v272_v44  ;;  %v294_v1 = vld [vmem:[#allocation5 + $0x100] sm:$0xff]  ;;  %v248_v2 = vld [vmem:[%s1109_s3 + $0x10] sm:$0xff]  ;;  %v249_v3 = vld [vmem:[%s1109_s3 + $0x18] sm:$0xff] }
  0x3b   : > { %435 = vmatpush.msra.mxu2 %v271_v42  ;;  %393 = vmatpush.msra.mxu1 %v304_v45  ;;  %v250_v4 = vld [vmem:[%s1109_s3 + $0x20] sm:$0xff]  ;;  %v251_v5 = vld [vmem:[%s1109_s3 + $0x28] sm:$0xff]  ;;  %v252_v6 = vld [vmem:[%s1109_s3 + $0x30] sm:$0xff] }
  0x3c   : > { %476 = vmatpush.msra.mxu3 %v303_v43  ;;  %353 = vmatpush.msra.mxu0 %v270_v48  ;;  %v253_v7 = vld [vmem:[%s1109_s3 + $0x38] sm:$0xff]  ;;  %v254_v8 = vld [vmem:[%s1109_s3 + $0x40] sm:$0xff]  ;;  %v255_v9 = vld [vmem:[%s1109_s3 + $0x48] sm:$0xff] }
  0x3d   : > { %436 = vmatpush.msra.mxu2 %v269_v46  ;;  %394 = vmatpush.msra.mxu1 %v302_v49  ;;  %v256_v10 = vld [vmem:[%s1109_s3 + $0x50] sm:$0xff]  ;;  %v257_v11 = vld [vmem:[%s1109_s3 + $0x58] sm:$0xff]  ;;  %v258_v12 = vld [vmem:[%s1109_s3 + $0x60] sm:$0xff] }
  0x3e   : > { %477 = vmatpush.msra.mxu3 %v301_v47  ;;  %354 = vmatpush.msra.mxu0 %v268_v52  ;;  %v259_v13 = vld [vmem:[%s1109_s3 + $0x68] sm:$0xff]  ;;  %v260_v14 = vld [vmem:[%s1109_s3 + $0x70] sm:$0xff]  ;;  %v261_v15 = vld [vmem:[%s1109_s3 + $0x78] sm:$0xff] }
  0x3f   : > { %437 = vmatpush.msra.mxu2 %v267_v50  ;;  %395 = vmatpush.msra.mxu1 %v300_v53 }
  0x40   : > { %478 = vmatpush.msra.mxu3 %v299_v51  ;;  %355 = vmatpush.msra.mxu0 %v266_v56 }
  0x41   : > { %438 = vmatpush.msra.mxu2 %v265_v54  ;;  %396 = vmatpush.msra.mxu1 %v298_v57 }
  0x42   : > { %479 = vmatpush.msra.mxu3 %v297_v55  ;;  %356 = vmatpush.msra.mxu0 %v264_v62 }
  0x43   : > { %439 = vmatpush.msra.mxu2 %v263_v58  ;;  %397 = vmatpush.msra.mxu1 %v296_v63 }
  0x44   : > { %480 = vmatpush.msra.mxu3 %v295_v59  ;;  %440 = vmatmul.f32.vlgmr.msra.gmra.mxu2 %v246_v60 }
  0x45   : > { %481 = vmatmul.f32.vlgmr.msra.gmra.mxu3 %v247_v61  ;;  %357 = vmatpush.msra.mxu0 %v262_v0 }
  0x46   : > { %398 = vmatpush.msra.mxu1 %v294_v1  ;;  %358 = vmatmul.f32.vlgmr.msra.gmra.mxu0 %v246_v60 }
  0x47   : > { %399 = vmatmul.f32.vlgmr.msra.gmra.mxu1 %v247_v61 }
  0x4c   : > { %443 = vmatmul.f32.gmra.mxu2 %v248_v2 }
  0x4d   : > { %484 = vmatmul.f32.gmra.mxu3 %v249_v3 }
  0x4e   : > { %361 = vmatmul.f32.gmra.mxu0 %v248_v2 }
  0x4f   : > { %402 = vmatmul.f32.gmra.mxu1 %v249_v3 }
  0x54   : > { %446 = vmatmul.f32.gmra.mxu2 %v250_v4 }
  0x55   : > { %487 = vmatmul.f32.gmra.mxu3 %v251_v5 }
  0x56   : > { %364 = vmatmul.f32.gmra.mxu0 %v250_v4 }
  0x57   : > { %405 = vmatmul.f32.gmra.mxu1 %v251_v5 }
  0x5c   : > { %449 = vmatmul.f32.gmra.mxu2 %v252_v6 }
  0x5d   : > { %490 = vmatmul.f32.gmra.mxu3 %v253_v7 }
  0x5e   : > { %367 = vmatmul.f32.gmra.mxu0 %v252_v6 }
  0x5f   : > { %408 = vmatmul.f32.gmra.mxu1 %v253_v7 }
  0x64   : > { %452 = vmatmul.f32.gmra.mxu2 %v254_v8 }
  0x65   : > { %493 = vmatmul.f32.gmra.mxu3 %v255_v9 }
  0x66   : > { %370 = vmatmul.f32.gmra.mxu0 %v254_v8 }
  0x67   : > { %411 = vmatmul.f32.gmra.mxu1 %v255_v9 }
  0x6c   : > { %455 = vmatmul.f32.gmra.mxu2 %v256_v10 }
  0x6d   : > { %496 = vmatmul.f32.gmra.mxu3 %v257_v11 }
  0x6e   : > { %373 = vmatmul.f32.gmra.mxu0 %v256_v10 }
  0x6f   : > { %414 = vmatmul.f32.gmra.mxu1 %v257_v11 }
  0x74   : > { %458 = vmatmul.f32.gmra.mxu2 %v258_v12 }
  0x75   : > { %499 = vmatmul.f32.gmra.mxu3 %v259_v13 }
  0x76   : > { %376 = vmatmul.f32.gmra.mxu0 %v258_v12 }
  0x77   : > { %417 = vmatmul.f32.gmra.mxu1 %v259_v13 }
  0x7c   : > { %461 = vmatmul.f32.gmra.mxu2 %v260_v14 }
  0x7d   : > { %502 = vmatmul.f32.gmra.mxu3 %v261_v15 }
  0x7e   : > { %379 = vmatmul.f32.gmra.mxu0 %v260_v14 }
  0x7f   : > { %420 = vmatmul.f32.gmra.mxu1 %v261_v15 }
  0xc3   : > { %v359_v16 = vpop.f32.mrf.mxu0 }
  0xc4   : > { %v400_v17 = vpop.f32.mrf.mxu1 }
  0xc5   : > { %v401_v18 = vadd.f32 %v400_v17, %v359_v16 }
  0xc7   : > { %v441_v19 = vpop.f32.mrf.mxu2  ;;  %v557_v22 = vmul.f32 4.0, %v401_v18 }
  0xc8   : > { %v482_v20 = vpop.f32.mrf.mxu3 }
  0xc9   : > { %v483_v21 = vadd.f32 %v482_v20, %v441_v19  ;;  %v573_v23 = vmax.f32 %v557_v22, 0.0 }
  0xcb   : > { %v558_v24 = vmul.f32 4.0, %v483_v21  ;;  %v362_v25 = vpop.f32.mrf.mxu0  ;;  %589 = vst [vmem:[%s1137_s17] sm:$0xff] %v573_v23 }
  0xcc   : > { %v403_v26 = vpop.f32.mrf.mxu1 }
  0xcd   : > { %v574_v27 = vmax.f32 %v558_v24, 0.0  ;;  %v404_v28 = vadd.f32 %v403_v26, %v362_v25 }
  0xcf   : > { %v444_v29 = vpop.f32.mrf.mxu2  ;;  %590 = vst [vmem:[%s1137_s17 + $0x8] sm:$0xff] %v574_v27  ;;  %v559_v32 = vmul.f32 4.0, %v404_v28 }
  0xd0   : > { %v485_v30 = vpop.f32.mrf.mxu3 }
  0xd1   : > { %v486_v31 = vadd.f32 %v485_v30, %v444_v29  ;;  %v575_v33 = vmax.f32 %v559_v32, 0.0 }
  0xd3   : > { %v560_v34 = vmul.f32 4.0, %v486_v31  ;;  %v365_v35 = vpop.f32.mrf.mxu0  ;;  %591 = vst [vmem:[%s1137_s17 + $0x10] sm:$0xff] %v575_v33 }
  0xd4   : > { %v406_v36 = vpop.f32.mrf.mxu1 }
  0xd5   : > { %v576_v37 = vmax.f32 %v560_v34, 0.0  ;;  %v407_v38 = vadd.f32 %v406_v36, %v365_v35 }
  0xd7   : > { %v447_v39 = vpop.f32.mrf.mxu2  ;;  %592 = vst [vmem:[%s1137_s17 + $0x18] sm:$0xff] %v576_v37  ;;  %v561_v42 = vmul.f32 4.0, %v407_v38 }
  0xd8   : > { %v488_v40 = vpop.f32.mrf.mxu3 }
  0xd9   : > { %v489_v41 = vadd.f32 %v488_v40, %v447_v39  ;;  %v577_v43 = vmax.f32 %v561_v42, 0.0 }
  0xdb   : > { %v562_v44 = vmul.f32 4.0, %v489_v41  ;;  %v368_v45 = vpop.f32.mrf.mxu0  ;;  %593 = vst [vmem:[%s1137_s17 + $0x20] sm:$0xff] %v577_v43 }
  0xdc   : > { %v409_v46 = vpop.f32.mrf.mxu1 }
  0xdd   : > { %v578_v47 = vmax.f32 %v562_v44, 0.0  ;;  %v410_v48 = vadd.f32 %v409_v46, %v368_v45 }
  0xdf   : > { %v450_v49 = vpop.f32.mrf.mxu2  ;;  %594 = vst [vmem:[%s1137_s17 + $0x28] sm:$0xff] %v578_v47  ;;  %v563_v52 = vmul.f32 4.0, %v410_v48 }
  0xe0   : > { %v491_v50 = vpop.f32.mrf.mxu3 }
  0xe1   : > { %v492_v51 = vadd.f32 %v491_v50, %v450_v49  ;;  %v579_v53 = vmax.f32 %v563_v52, 0.0 }
  0xe3   : > { %v564_v54 = vmul.f32 4.0, %v492_v51  ;;  %v371_v55 = vpop.f32.mrf.mxu0  ;;  %595 = vst [vmem:[%s1137_s17 + $0x30] sm:$0xff] %v579_v53 }
  0xe4   : > { %v412_v56 = vpop.f32.mrf.mxu1 }
  0xe5   : > { %v580_v57 = vmax.f32 %v564_v54, 0.0  ;;  %v413_v58 = vadd.f32 %v412_v56, %v371_v55 }
  0xe7   : > { %v453_v59 = vpop.f32.mrf.mxu2  ;;  %596 = vst [vmem:[%s1137_s17 + $0x38] sm:$0xff] %v580_v57  ;;  %v565_v62 = vmul.f32 4.0, %v413_v58 }
  0xe8   : > { %v494_v60 = vpop.f32.mrf.mxu3 }
  0xe9   : > { %v495_v61 = vadd.f32 %v494_v60, %v453_v59  ;;  %v581_v63 = vmax.f32 %v565_v62, 0.0 }
  0xeb   : > { %v566_v0 = vmul.f32 4.0, %v495_v61  ;;  %v374_v1 = vpop.f32.mrf.mxu0  ;;  %597 = vst [vmem:[%s1137_s17 + $0x40] sm:$0xff] %v581_v63 }
  0xec   : > { %v415_v2 = vpop.f32.mrf.mxu1 }
  0xed   : > { %v582_v3 = vmax.f32 %v566_v0, 0.0  ;;  %v416_v4 = vadd.f32 %v415_v2, %v374_v1 }
  0xef   : > { %v456_v5 = vpop.f32.mrf.mxu2  ;;  %598 = vst [vmem:[%s1137_s17 + $0x48] sm:$0xff] %v582_v3  ;;  %v567_v8 = vmul.f32 4.0, %v416_v4 }
  0xf0   : > { %v497_v6 = vpop.f32.mrf.mxu3 }
  0xf1   : > { %v498_v7 = vadd.f32 %v497_v6, %v456_v5  ;;  %v583_v9 = vmax.f32 %v567_v8, 0.0 }
  0xf3   : > { %v568_v10 = vmul.f32 4.0, %v498_v7  ;;  %v377_v11 = vpop.f32.mrf.mxu0  ;;  %599 = vst [vmem:[%s1137_s17 + $0x50] sm:$0xff] %v583_v9 }
  0xf4   : > { %v418_v12 = vpop.f32.mrf.mxu1 }
  0xf5   : > { %v584_v13 = vmax.f32 %v568_v10, 0.0  ;;  %v419_v14 = vadd.f32 %v418_v12, %v377_v11 }
  0xf7   : > { %v459_v15 = vpop.f32.mrf.mxu2  ;;  %600 = vst [vmem:[%s1137_s17 + $0x58] sm:$0xff] %v584_v13  ;;  %v569_v18 = vmul.f32 4.0, %v419_v14 }
  0xf8   : > { %v500_v16 = vpop.f32.mrf.mxu3 }
  0xf9   : > { %v501_v17 = vadd.f32 %v500_v16, %v459_v15  ;;  %v585_v19 = vmax.f32 %v569_v18, 0.0 }
  0xfb   : > { %v570_v20 = vmul.f32 4.0, %v501_v17  ;;  %v380_v21 = vpop.f32.mrf.mxu0  ;;  %601 = vst [vmem:[%s1137_s17 + $0x60] sm:$0xff] %v585_v19 }
  0xfc   : > { %v421_v22 = vpop.f32.mrf.mxu1 }
  0xfd   : > { %v586_v23 = vmax.f32 %v570_v20, 0.0  ;;  %v422_v24 = vadd.f32 %v421_v22, %v380_v21 }
  0xff   : > { %v462_v25 = vpop.f32.mrf.mxu2  ;;  %602 = vst [vmem:[%s1137_s17 + $0x68] sm:$0xff] %v586_v23  ;;  %v571_v28 = vmul.f32 4.0, %v422_v24 }
 0x100   : > { %v503_v26 = vpop.f32.mrf.mxu3 }
 0x101   : > { %v504_v27 = vadd.f32 %v503_v26, %v462_v25  ;;  %v587_v29 = vmax.f32 %v571_v28, 0.0 }
 0x103   : > { %v572_v30 = vmul.f32 4.0, %v504_v27  ;;  %603 = vst [vmem:[%s1137_s17 + $0x70] sm:$0xff] %v587_v29 }
 0x105   : > { %v588_v31 = vmax.f32 %v572_v30, 0.0 }
 0x107   : > { %604 = vst [vmem:[%s1137_s17 + $0x78] sm:$0xff] %v588_v31 }
 0x108   : > { %917 = shalt.err (!%p914_p0)
}
 0x109   : > { %s981_s30 = smov 256   ;;  %s982_s5 = smov 16  }
 0x10a   : > { %758 = dma.vmem_to_hbm [thread:$0]  (%p1080_p5), %s622_s6, 2048, %s624_s12, %s606_s15, %s981_s30, %s981_s30, %s982_s5  }
 0x10b PF: > { %s638_s7 = sand.u32 1, %s956_s9   ;;  %p769_p3 = pnand %p733_p11, %p1047_p6 }
 0x10c   : > { %s639_s3 = scalar_lea.sflag [#allocation4], %s638_s7 }
 0x10d   : > { %p770_p7 = pneg %p769_p3 }
 0x10f   : > { %951 = dma.done.wait (%p770_p7), %s639_s3, 2048  }
 0x110   : > { %953 = vsyncadd (%p770_p7), %s639_s3, 4294965248  ;;  %s19_s14 = sadd.s32 1, %s976_s14   ;;  %s1204_s9 = smov %s960_s10 }
 0x111   : > { %p16_p9 = scmp.ge.s32.totalorder %s19_s14, 4   ;;  %s1205_s10 = smov %s964_s11 }
 0x112   : > { %s1206_s11 = smov %s1089_s8  ;;  %s1207_s12 = smov %s972_s13 }
 0x113   : > { %s1208_s13 = smov %s1210_s29  ;;  %18 = sbr.rel (!%p16_p9) target bundleno = 7 (0x7), region = 86 }
 0x118   :  { %645 = vsyncpa [#allocation3], 1 }
 0x119   :  { %647 = vsyncpa [#allocation3 + $0x1], 1 }
 0x11a   :  { %648 = vsyncpa [#allocation6], 1 }
 0x11b   :  { %649 = vsyncpa [#allocation4], 1 }
 0x11c   :  { %651 = vsyncpa [#allocation4 + $0x1], 1 }

</bundles_post_ra>
